<compile_context>
chip_gen: v6e
topology: v6e:2x2x1
jax: 0.10.0
libtpu: 0.0.40
codegen_flags: <defaults>
</compile_context>

<pallas_src>
import functools

import jax
import jax.numpy as jnp
from jax.experimental import pallas as pl
from jax.experimental.pallas import tpu as pltpu


NEG_SLOPE = 0.01            # LeakyReLU slope from config['scoring_function']['activation']
SOFTPLUS_THRESHOLD = 20.0   # torch.nn.Softplus default threshold (beta=1)
EPS_NORM = 1e-8
BN_EPS = 1e-5
LANE = 128                  # TPU vreg lane width


def _leaky_relu(x):
    return jnp.where(x >= 0.0, x, NEG_SLOPE * x)


def _softplus(x):
    # torch.nn.Softplus(beta=1): x if x > threshold else log(1 + exp(x))
    return jnp.where(x > SOFTPLUS_THRESHOLD,
                     x,
                     jnp.log1p(jnp.exp(jnp.minimum(x, SOFTPLUS_THRESHOLD))))


def scoring_kernel(xt_ref,
                   w1t_ref, c1_ref,
                   w2t_ref, c2_ref,
                   w3t_ref, b3_ref,
                   ot_ref):
    """One batch tile, feature-major: activations are (feat, TM), batch on lanes."""
    x = xt_ref[...]                                                   # (C, TM) f32

    # Layer 1: Linear with BN+bias pre-folded into (W1^T, c1)
    h = jnp.dot(w1t_ref[...], x, preferred_element_type=jnp.float32) + c1_ref[...]
    h = _leaky_relu(h)                                                # (H1, TM)

    # Layer 2
    h = jnp.dot(w2t_ref[...], h, preferred_element_type=jnp.float32) + c2_ref[...]
    h = _leaky_relu(h)                                                # (H2, TM)

    # Final linear + Softplus
    r = jnp.dot(w3t_ref[...], h, preferred_element_type=jnp.float32) + b3_ref[...]
    r = _softplus(r)                                                  # (C, TM)

    # Per-row (= per lane column) min-max normalization over the C sublanes.
    r_min = jnp.min(r, axis=0, keepdims=True)                         # (1, TM)
    r_max = jnp.max(r, axis=0, keepdims=True)
    inv = pl.reciprocal(r_max - r_min + EPS_NORM, approx=True)
    ot_ref[...] = (r - r_min) * inv                                   # lane-dense store


def _round_up(n, m):
    return ((n + m - 1) // m) * m


@functools.partial(jax.jit, static_argnames=("block_cols",))
def scoring_function_forward(x, params, block_cols=8192):
    """x: (B, C) probability vectors. Returns (B, C) float32 scores in [0, 1]."""
    (w1, c1, w2, c2, w3, b3) = params          # (in,out) folded weights, (1,out) shifts
    if x.ndim == 1:                            # mirrors the torch unsqueeze(0)
        x = x[None, :]
    x = x.astype(jnp.float32)
    B, C = x.shape
    H1, H2 = w1.shape[1], w2.shape[1]

    # Batch lives on the lane axis: tile TM lanes per grid step (multiple of 128).
    b_min = _round_up(B, LANE)
    tm = min(_round_up(int(block_cols), LANE), b_min)
    if b_min >= 2 * LANE:
        # Guarantee >= 2 grid steps so the "parallel" batch axis can shard across
        # both TensorCores on v7x (harmless on v5e/v6e).
        tm = min(tm, _round_up(b_min // 2, LANE))
    b_pad = _round_up(B, tm)
    grid = (b_pad // tm,)

    x_p = jnp.pad(x, ((0, b_pad - B), (0, 0))) if b_pad != B else x
    x_t = x_p.T                                                  # (C, b_pad) feature-major

    # Transposed operands for h = W^T @ x_T; shifts become column vectors.
    w1t, w2t, w3t = w1.T, w2.T, w3.T                             # (H1,C), (H2,H1), (C,H2)
    c1t = c1.reshape(H1, 1)
    c2t = c2.reshape(H2, 1)
    b3t = b3.reshape(C, 1)

    def tile_spec(rows):
        return pl.BlockSpec((rows, tm), lambda i: (0, i))

    def const_spec(shape):
        # Same block every grid step -> stays VMEM-resident, no re-DMA.
        return pl.BlockSpec(shape, lambda i: (0, 0))

    param_bytes = sum(int(a.size) * a.dtype.itemsize
                      for a in (w1t, c1t, w2t, c2t, w3t, b3t))
    cost = pl.CostEstimate(
        flops=2 * b_pad * (C * H1 + H1 * H2 + H2 * C),
        transcendentals=b_pad * (2 * C + 1),     # softplus exp/log1p + per-row recip
        bytes_accessed=2 * int(x_t.size) * 4 + param_bytes,
    )

    out_t = pl.pallas_call(
        scoring_kernel,
        out_shape=jax.ShapeDtypeStruct((C, b_pad), jnp.float32),
        grid=grid,
        in_specs=[tile_spec(C),
                  const_spec(w1t.shape), const_spec(c1t.shape),
                  const_spec(w2t.shape), const_spec(c2t.shape),
                  const_spec(w3t.shape), const_spec(b3t.shape)],
        out_specs=tile_spec(C),
        compiler_params=pltpu.CompilerParams(dimension_semantics=("parallel",)),
        cost_estimate=cost,
    )(x_t, w1t, c1t, w2t, c2t, w3t, b3t)

    return out_t.T[:B]


# ---------------------------------------------------------------------------
# Deterministic parameter construction (mirrors ScoringFunction._init_weights,
# with eval-mode BatchNorm + bias folded into the weights / shifts).
# ---------------------------------------------------------------------------
def xavier_uniform(key, fan_in, fan_out, gain):
    bound = gain * jnp.sqrt(6.0 / (fan_in + fan_out))
    # stored as (in, out) so math reads as x @ W
    return jax.random.uniform(key, (fan_in, fan_out), jnp.float32, -bound, bound)


def make_params(key, input_dim, hidden_dims, output_dim, gain=0.01):
    dims = [input_dim] + list(hidden_dims) + [output_dim]
    keys = jax.random.split(key, len(dims) - 1)
    ws, bs = [], []
    for k, (din, dout) in zip(keys, zip(dims[:-1], dims[1:])):
        ws.append(xavier_uniform(k, din, dout, gain=gain))        # xavier_uniform_(gain)
        bs.append(jnp.full((1, dout), -0.1, jnp.float32))         # constant_(bias, -0.1)

    # BatchNorm1d eval-mode with default init: gamma=1, beta=0, mean=0, var=1
    #   y = x * scale + shift,  scale = 1/sqrt(1+eps), shift = 0
    def bn_affine(dim):
        scale = jnp.full((1, dim), 1.0, jnp.float32) / jnp.sqrt(1.0 + BN_EPS)
        shift = jnp.zeros((1, dim), jnp.float32)
        return scale, shift

    s1, t1 = bn_affine(hidden_dims[0])
    s2, t2 = bn_affine(hidden_dims[1])

    # Fold: (x @ w + b) * s + t == x @ (w * s) + (b * s + t)   (exact, eval mode)
    w1f = ws[0] * s1
    c1 = bs[0] * s1 + t1
    w2f = ws[1] * s2
    c2 = bs[1] * s2 + t2
    return (w1f, c1, w2f, c2, ws[2], bs[2])


# ---------------------------------------------------------------------------
# Pure-JAX reference for sanity checking (same folded parameters)
# ---------------------------------------------------------------------------
def reference_forward(x, params):
    (w1, c1, w2, c2, w3, b3) = params
    h = x @ w1 + c1
    h = jnp.where(h >= 0, h, NEG_SLOPE * h)
    h = h @ w2 + c2
    h = jnp.where(h >= 0, h, NEG_SLOPE * h)
    r = h @ w3 + b3
    r = jnp.where(r > SOFTPLUS_THRESHOLD, r,
                  jnp.log1p(jnp.exp(jnp.minimum(r, SOFTPLUS_THRESHOLD))))
    rmin = r.min(axis=1, keepdims=True)
    rmax = r.max(axis=1, keepdims=True)
    return (r - rmin) / (rmax - rmin + EPS_NORM)


if __name__ == "__main__":
    key = jax.random.PRNGKey(0)
    k_x, k_p, k_x2, k_x3 = jax.random.split(key, 4)

    num_classes = 16            # config['dataset']['num_classes']
    hidden_dims = [64, 32]

    # --- 1) Spec-faithful init (gain=0.01, bias=-0.1), small batch. With this
    # init the pre-normalization score spread is only ~1e-5, so min-max
    # normalization amplifies f32 matmul-rounding/approx-reciprocal noise by
    # ~1e5x; a 2e-2 tolerance on the normalized [0,1] scores corresponds to
    # sub-1e-7 agreement on the raw scores.
    params = make_params(k_p, num_classes, hidden_dims, num_classes, gain=0.01)
    x = jax.nn.softmax(jax.random.normal(k_x, (8, num_classes), jnp.float32), axis=-1)
    scores = jax.block_until_ready(scoring_function_forward(x, params))
    ref = reference_forward(x, params)
    assert scores.shape == (8, num_classes)
    assert bool(jnp.all(jnp.isfinite(scores)))
    assert bool(jnp.all((scores >= -1e-6) & (scores <= 1.0 + 1e-6)))
    assert jnp.allclose(scores, ref, atol=2e-2, rtol=0), "spec-init mismatch vs reference"

    # --- 2) Strong numerical check with a larger-gain init (bigger raw-score
    # spread, no amplification) on a ragged batch: exercises pad-to-tile + slice.
    params_big = make_params(k_p, num_classes, hidden_dims, num_classes, gain=0.5)
    xr = jax.nn.softmax(jax.random.normal(k_x2, (13, num_classes), jnp.float32), axis=-1)
    scores_r = jax.block_until_ready(scoring_function_forward(xr, params_big))
    ref_r = reference_forward(xr, params_big)
    assert scores_r.shape == (13, num_classes)
    assert jnp.allclose(scores_r, ref_r, atol=1e-2, rtol=0), "ragged mismatch vs reference"

    # --- 3) Multi-tile grid (>= 2 steps; both TensorCores on v7x).
    xb = jax.nn.softmax(jax.random.normal(k_x3, (2048, num_classes), jnp.float32), axis=-1)
    scores_b = jax.block_until_ready(
        scoring_function_forward(xb, params_big, block_cols=1024))
    ref_b = reference_forward(xb, params_big)
    assert scores_b.shape == (2048, num_classes)
    assert jnp.allclose(scores_b, ref_b, atol=1e-2, rtol=0), "multi-tile mismatch vs reference"

    print("KERNEL_OK")
</pallas_src>

<mosaic_0001>
module attributes {stable_mosaic.version = 11 : i64} {
  func.func @scoring_kernel(%arg0: i32, %arg1: memref<16x128xf32, #tpu.memory_space<vmem>>, %arg2: memref<64x16xf32, #tpu.memory_space<vmem>>, %arg3: memref<64x1xf32, #tpu.memory_space<vmem>>, %arg4: memref<32x64xf32, #tpu.memory_space<vmem>>, %arg5: memref<32x1xf32, #tpu.memory_space<vmem>>, %arg6: memref<16x32xf32, #tpu.memory_space<vmem>>, %arg7: memref<16x1xf32, #tpu.memory_space<vmem>>, %arg8: memref<16x128xf32, #tpu.memory_space<vmem>>) attributes {dimension_semantics = [#tpu.dimension_semantics<parallel>], iteration_bounds = array<i64: 1>, scalar_prefetch = 0 : i64, scratch_operands = 0 : i64, tpu.core_type = #tpu.core_type<tc>, window_params = [{transform_indices = @transform_0, window_bounds = array<i64: 16, 128>}, {pipeline_mode = #tpu.pipeline_mode<synchronous>, transform_indices = @transform_1, window_bounds = array<i64: 64, 16>}, {pipeline_mode = #tpu.pipeline_mode<synchronous>, transform_indices = @transform_2, window_bounds = array<i64: 64, 1>}, {pipeline_mode = #tpu.pipeline_mode<synchronous>, transform_indices = @transform_3, window_bounds = array<i64: 32, 64>}, {pipeline_mode = #tpu.pipeline_mode<synchronous>, transform_indices = @transform_4, window_bounds = array<i64: 32, 1>}, {pipeline_mode = #tpu.pipeline_mode<synchronous>, transform_indices = @transform_5, window_bounds = array<i64: 16, 32>}, {pipeline_mode = #tpu.pipeline_mode<synchronous>, transform_indices = @transform_6, window_bounds = array<i64: 16, 1>}, {transform_indices = @transform_7, window_bounds = array<i64: 16, 128>}]} {
    %c0 = arith.constant 0 : index
    %c0_0 = arith.constant 0 : index
    %0 = vector.load %arg1[%c0, %c0_0] : memref<16x128xf32, #tpu.memory_space<vmem>>, vector<16x128xf32>
    %c0_1 = arith.constant 0 : index
    %c0_2 = arith.constant 0 : index
    %1 = vector.load %arg2[%c0_1, %c0_2] : memref<64x16xf32, #tpu.memory_space<vmem>>, vector<64x16xf32>
    %cst = arith.constant dense<0.000000e+00> : vector<64x128xf32>
    %2 = tpu.matmul %1, %0, %cst {dimension_numbers = #tpu.dot_dimension_numbers<[1], [0], [0], [1], [0, 0, 1, 1], [], []>} : vector<64x16xf32>, vector<16x128xf32>, vector<64x128xf32> -> vector<64x128xf32>
    %c0_3 = arith.constant 0 : index
    %c0_4 = arith.constant 0 : index
    %3 = vector.load %arg3[%c0_3, %c0_4] : memref<64x1xf32, #tpu.memory_space<vmem>>, vector<64x1xf32>
    %4 = vector.broadcast %3 : vector<64x1xf32> to vector<64x128xf32>
    %5 = arith.addf %2, %4 : vector<64x128xf32>
    %cst_5 = arith.constant 0.000000e+00 : f32
    %6 = vector.broadcast %cst_5 : f32 to vector<64x128xf32>
    %7 = arith.cmpf oge, %5, %6 : vector<64x128xf32>
    %cst_6 = arith.constant 0.00999999977 : f32
    %8 = vector.broadcast %cst_6 : f32 to vector<64x128xf32>
    %9 = arith.mulf %8, %5 : vector<64x128xf32>
    %10 = arith.select %7, %5, %9 : vector<64x128xi1>, vector<64x128xf32>
    %c0_7 = arith.constant 0 : index
    %c0_8 = arith.constant 0 : index
    %11 = vector.load %arg4[%c0_7, %c0_8] : memref<32x64xf32, #tpu.memory_space<vmem>>, vector<32x64xf32>
    %cst_9 = arith.constant dense<0.000000e+00> : vector<32x128xf32>
    %12 = tpu.matmul %11, %10, %cst_9 {dimension_numbers = #tpu.dot_dimension_numbers<[1], [0], [0], [1], [0, 0, 1, 1], [], []>} : vector<32x64xf32>, vector<64x128xf32>, vector<32x128xf32> -> vector<32x128xf32>
    %c0_10 = arith.constant 0 : index
    %c0_11 = arith.constant 0 : index
    %13 = vector.load %arg5[%c0_10, %c0_11] : memref<32x1xf32, #tpu.memory_space<vmem>>, vector<32x1xf32>
    %14 = vector.broadcast %13 : vector<32x1xf32> to vector<32x128xf32>
    %15 = arith.addf %12, %14 : vector<32x128xf32>
    %cst_12 = arith.constant 0.000000e+00 : f32
    %16 = vector.broadcast %cst_12 : f32 to vector<32x128xf32>
    %17 = arith.cmpf oge, %15, %16 : vector<32x128xf32>
    %cst_13 = arith.constant 0.00999999977 : f32
    %18 = vector.broadcast %cst_13 : f32 to vector<32x128xf32>
    %19 = arith.mulf %18, %15 : vector<32x128xf32>
    %20 = arith.select %17, %15, %19 : vector<32x128xi1>, vector<32x128xf32>
    %c0_14 = arith.constant 0 : index
    %c0_15 = arith.constant 0 : index
    %21 = vector.load %arg6[%c0_14, %c0_15] : memref<16x32xf32, #tpu.memory_space<vmem>>, vector<16x32xf32>
    %cst_16 = arith.constant dense<0.000000e+00> : vector<16x128xf32>
    %22 = tpu.matmul %21, %20, %cst_16 {dimension_numbers = #tpu.dot_dimension_numbers<[1], [0], [0], [1], [0, 0, 1, 1], [], []>} : vector<16x32xf32>, vector<32x128xf32>, vector<16x128xf32> -> vector<16x128xf32>
    %c0_17 = arith.constant 0 : index
    %c0_18 = arith.constant 0 : index
    %23 = vector.load %arg7[%c0_17, %c0_18] : memref<16x1xf32, #tpu.memory_space<vmem>>, vector<16x1xf32>
    %24 = vector.broadcast %23 : vector<16x1xf32> to vector<16x128xf32>
    %25 = arith.addf %22, %24 : vector<16x128xf32>
    %cst_19 = arith.constant 2.000000e+01 : f32
    %26 = vector.broadcast %cst_19 : f32 to vector<16x128xf32>
    %27 = arith.cmpf ogt, %25, %26 : vector<16x128xf32>
    %cst_20 = arith.constant 2.000000e+01 : f32
    %28 = vector.broadcast %cst_20 : f32 to vector<16x128xf32>
    %29 = arith.minimumf %25, %28 : vector<16x128xf32>
    %30 = math.exp %29 : vector<16x128xf32>
    %31 = math.log1p %30 : vector<16x128xf32>
    %32 = arith.select %27, %25, %31 : vector<16x128xi1>, vector<16x128xf32>
    %cst_21 = arith.constant dense<0x7F800000> : vector<128xf32>
    %33 = vector.multi_reduction <minimumf>, %32, %cst_21 [0] : vector<16x128xf32> to vector<128xf32>
    %34 = vector.shape_cast %33 : vector<128xf32> to vector<1x128xf32>
    %cst_22 = arith.constant dense<0xFF800000> : vector<128xf32>
    %35 = vector.multi_reduction <maximumf>, %32, %cst_22 [0] : vector<16x128xf32> to vector<128xf32>
    %36 = vector.shape_cast %35 : vector<128xf32> to vector<1x128xf32>
    %37 = arith.subf %36, %34 : vector<1x128xf32>
    %cst_23 = arith.constant 9.99999993E-9 : f32
    %38 = vector.broadcast %cst_23 : f32 to vector<1x128xf32>
    %39 = arith.addf %37, %38 : vector<1x128xf32>
    %40 = tpu.reciprocal %39 {approx = true} : vector<1x128xf32> -> vector<1x128xf32>
    %41 = vector.broadcast %34 : vector<1x128xf32> to vector<16x128xf32>
    %42 = arith.subf %32, %41 : vector<16x128xf32>
    %43 = vector.broadcast %40 : vector<1x128xf32> to vector<16x128xf32>
    %44 = arith.mulf %42, %43 : vector<16x128xf32>
    %c0_24 = arith.constant 0 : index
    %c0_25 = arith.constant 0 : index
    %45 = vector.load %arg8[%c0_24, %c0_25] : memref<16x128xf32, #tpu.memory_space<vmem>>, vector<16x128xf32>
    tpu.vector_store %arg8[%c0_24, %c0_25], %44 {strides = array<i32>} : memref<16x128xf32, #tpu.memory_space<vmem>>, vector<16x128xf32>,
    return
  }
  func.func @transform_0(%arg0: i32) -> (i32, i32) {
    %c0_i32 = arith.constant 0 : i32
    %c0_i32_0 = arith.constant 0 : i32
    return %c0_i32, %arg0 : i32, i32
  }
  func.func @transform_1(%arg0: i32) -> (i32, i32) {
    %c0_i32 = arith.constant 0 : i32
    %c0_i32_0 = arith.constant 0 : i32
    %c0_i32_1 = arith.constant 0 : i32
    return %c0_i32, %c0_i32_0 : i32, i32
  }
  func.func @transform_2(%arg0: i32) -> (i32, i32) {
    %c0_i32 = arith.constant 0 : i32
    %c0_i32_0 = arith.constant 0 : i32
    %c0_i32_1 = arith.constant 0 : i32
    return %c0_i32, %c0_i32_0 : i32, i32
  }
  func.func @transform_3(%arg0: i32) -> (i32, i32) {
    %c0_i32 = arith.constant 0 : i32
    %c0_i32_0 = arith.constant 0 : i32
    %c0_i32_1 = arith.constant 0 : i32
    return %c0_i32, %c0_i32_0 : i32, i32
  }
  func.func @transform_4(%arg0: i32) -> (i32, i32) {
    %c0_i32 = arith.constant 0 : i32
    %c0_i32_0 = arith.constant 0 : i32
    %c0_i32_1 = arith.constant 0 : i32
    return %c0_i32, %c0_i32_0 : i32, i32
  }
  func.func @transform_5(%arg0: i32) -> (i32, i32) {
    %c0_i32 = arith.constant 0 : i32
    %c0_i32_0 = arith.constant 0 : i32
    %c0_i32_1 = arith.constant 0 : i32
    return %c0_i32, %c0_i32_0 : i32, i32
  }
  func.func @transform_6(%arg0: i32) -> (i32, i32) {
    %c0_i32 = arith.constant 0 : i32
    %c0_i32_0 = arith.constant 0 : i32
    %c0_i32_1 = arith.constant 0 : i32
    return %c0_i32, %c0_i32_0 : i32, i32
  }
  func.func @transform_7(%arg0: i32) -> (i32, i32) {
    %c0_i32 = arith.constant 0 : i32
    %c0_i32_0 = arith.constant 0 : i32
    return %c0_i32, %arg0 : i32, i32
  }
}

</mosaic_0001>

<bundles_post_ra>
// kernel: scoring_function_forward.1
= control target key start
LH: loop header
LB: loop body
LE: loop exit
PB: predicated region body
PF: predicated region fallthrough
CT: control target
= control target key end

     0   :  { %vm84_vm0 = vcmask 130048   ;;  %v631_v3 = vmov 0   ;;  %vm266_vm1 = vcmask 523264   ;;  %vm390_vm10 = vcmask 261120   ;;  %s782_s0 = inlined_call_operand.vmem [shape: f32[16,128], index: 0, kind: input, shape index: {}]   ;;  %s783_s1 = inlined_call_operand.vmem [shape: f32[64,16], index: 1, kind: input, shape index: {}]   ;;  %s784_s2 = inlined_call_operand.vmem [shape: f32[64,1], index: 2, kind: input, shape index: {}]   ;;  %s785_s4 = inlined_call_operand.vmem [shape: f32[32,1], index: 4, kind: input, shape index: {}]   ;;  %s786_s6 = inlined_call_operand.vmem [shape: f32[16,1], index: 6, kind: input, shape index: {}]   ;;  %s787_s3 = inlined_call_operand.vmem [shape: f32[32,64], index: 3, kind: input, shape index: {}]   ;;  %s788_s5 = inlined_call_operand.vmem [shape: f32[16,32], index: 5, kind: input, shape index: {}]   ;;  %s789_s7 = inlined_call_operand.vmem [shape: f32[16,128], index: 7, kind: output, shape index: {}]  }
   0x1   :  { %v27_v0 = vld [vmem:[%s782_s0 + $0x8] sm:$0xff]  ;;  %v26_v1 = vld [vmem:[%s782_s0] sm:$0xff]  ;;  %619 = vset.pattern.permute.xlu0 %v631_v3  ;;  %620 = vset.pattern.permute.xlu1 %v631_v3  ;;  %v30_v5 = vld [vmem:[%s783_s1 + $0x10] sm:$0xff] }
   0x2   :  { %v28_v2 = vld [vmem:[%s783_s1] sm:$0xff]  ;;  %569 = vmatprep.subr.mxu0 %v27_v0  ;;  %v29_v4 = vld [vmem:[%s783_s1 + $0x8] sm:$0xff]  ;;  %v43_v6 = vld [vmem:[%s784_s2 + $0x38] sm:$0xff] }
   0x3   :  { %573 = vmatprep.mubr.msk.f32.mxu0 %vm84_vm0, %v28_v2  ;;  %570 = vmatpush3.msra.mxu0 %v27_v0  ;;  %v41_v7 = vld [vmem:[%s784_s2 + $0x28] sm:$0xff]  ;;  %v42_v8 = vld [vmem:[%s784_s2 + $0x30] sm:$0xff]  ;;  %v31_v9 = vld [vmem:[%s783_s1 + $0x18] sm:$0xff] }
   0x4   :  { %571 = vmatprep.subr.mxu0 %v26_v1  ;;  %81 = vperm.xlu0 %619, %v43_v6   ;;  %v40_v10 = vld [vmem:[%s784_s2 + $0x20] sm:$0xff]  ;;  %v39_v12 = vld [vmem:[%s784_s2 + $0x18] sm:$0xff]  ;;  %v33_v13 = vld [vmem:[%s783_s1 + $0x28] sm:$0xff] }
   0x5   :  { %572 = vmatpush3.msra.mxu0 %v26_v1  ;;  %71 = vperm.xlu1 %620, %v41_v7   ;;  %v32_v11 = vld [vmem:[%s783_s1 + $0x20] sm:$0xff]  ;;  %v38_v14 = vld [vmem:[%s784_s2 + $0x10] sm:$0xff]  ;;  %v37_v16 = vld [vmem:[%s784_s2 + $0x8] sm:$0xff] }
   0x6   :  { %574 = vmatmul.mubr.msk.f32.vlgmr.msra.gmra.mxu0 %vm84_vm0, %v29_v4  ;;  %v34_v15 = vld [vmem:[%s783_s1 + $0x30] sm:$0xff]  ;;  %v35_v17 = vld [vmem:[%s783_s1 + $0x38] sm:$0xff]  ;;  %v36_v18 = vld [vmem:[%s784_s2] sm:$0xff] }
   0x7   :  { %576 = vmatprep.mubr.msk.f32.mxu0 %vm84_vm0, %v30_v5  ;;  %v245_v19 = vld [vmem:[%s785_s4 + $0x18] sm:$0xff]  ;;  %v244_v20 = vld [vmem:[%s785_s4 + $0x10] sm:$0xff]  ;;  %v243_v21 = vld [vmem:[%s785_s4 + $0x8] sm:$0xff] }
   0x8   :  { %76 = vperm.xlu0 %619, %v42_v8   ;;  %v242_v22 = vld [vmem:[%s785_s4] sm:$0xff]  ;;  %v379_v24 = vld [vmem:[%s786_s6 + $0x8] sm:$0xff]  ;;  %v240_v3 = vld [vmem:[%s787_s3 + $0x10] sm:$0xff] }
   0x9   :  { %66 = vperm.xlu1 %620, %v40_v10   ;;  %v378_v23 = vld [vmem:[%s786_s6] sm:$0xff]  ;;  %v239_v2 = vld [vmem:[%s787_s3 + $0x8] sm:$0xff]  ;;  %v241_v4 = vld [vmem:[%s787_s3 + $0x18] sm:$0xff] }
   0xa   :  { %577 = vmatmul.mubr.msk.f32.gmra.mxu0 %vm84_vm0, %v31_v9  ;;  %v238_v25 = vld [vmem:[%s787_s3] sm:$0xff] }
   0xb   :  { %579 = vmatprep.mubr.msk.f32.mxu0 %vm84_vm0, %v32_v11  ;;  %601 = vmatprep.mubr.msk.f32.mxu1 %vm266_vm1, %v238_v25  ;;  %v376_v5 = vld [vmem:[%s788_s5] sm:$0xff] }
   0xc   :  { %61 = vperm.xlu0 %619, %v39_v12  }
   0xd   :  { %56 = vperm.xlu1 %620, %v38_v14  }
   0xe   :  { %580 = vmatmul.mubr.msk.f32.gmra.mxu0 %vm84_vm0, %v33_v13 }
   0xf   :  { %582 = vmatprep.mubr.msk.f32.mxu0 %vm84_vm0, %v34_v15 }
  0x10   :  { %51 = vperm.xlu0 %619, %v37_v16  }
  0x11   :  { %46 = vperm.xlu1 %620, %v36_v18  }
  0x12   :  { %583 = vmatmul.mubr.msk.f32.gmra.mxu0 %vm84_vm0, %v35_v17 }
  0x13   :  { %615 = vmatprep.mubr.msk.f32.mxu0 %vm390_vm10, %v376_v5 }
  0x14   :  { %263 = vperm.xlu0 %619, %v245_v19  }
  0x15   :  { %258 = vperm.xlu1 %620, %v244_v20  }
  0x18   :  { %253 = vperm.xlu0 %619, %v243_v21  }
  0x19   :  { %248 = vperm.xlu1 %620, %v242_v22  }
  0x1c   :  { %382 = vperm.xlu0 %619, %v378_v23  }
  0x1d   :  { %387 = vperm.xlu1 %620, %v379_v24  }
  0x7f   :  { %v82_v27 = vpop.permute.xlu0 %81 }
  0x80   :  { %v72_v28 = vpop.permute.xlu1 %71 }
  0x83   :  { %v77_v32 = vpop.permute.xlu0 %76 }
  0x84   :  { %v67_v33 = vpop.permute.xlu1 %66 }
  0x87   :  { %v62_v37 = vpop.permute.xlu0 %61 }
  0x88   :  { %v57_v40 = vpop.permute.xlu1 %56 }
  0x8b   :  { %v52_v52 = vpop.permute.xlu0 %51 }
  0x8c   :  { %v47_v53 = vpop.permute.xlu1 %46 }
  0x8f   :  { %v264_v6 = vpop.permute.xlu0 %263 }
  0x90   :  { %v259_v7 = vpop.permute.xlu1 %258 }
  0x93   :  { %v254_v10 = vpop.permute.xlu0 %253 }
  0x94   :  { %v249_v14 = vpop.permute.xlu1 %248 }
  0xc6   :  { %v575_v26 = vpop.f32.mrf.mxu0 }
  0xc7   :  { %v181_v54 = vadd.f32 %v575_v26, %v52_v52  ;;  %v377_v26 = vld [vmem:[%s788_s5 + $0x8] sm:$0xff] }
  0xc8   :  { %v175_v29 = vpop.f32.mrf.mxu0 }
  0xc9   :  { %v176_v57 = vadd.f32 %v175_v29, %v47_v53  ;;  %v223_v60 = vmul.f32 0.01, %v181_v54  ;;  %vm215_vm8 = vcmp.ge.f32.partialorder %v181_v54, 0.0 }
  0xca   :  { %v578_v30 = vpop.f32.mrf.mxu0 }
  0xcb   :  { %v191_v45 = vadd.f32 %v578_v30, %v62_v37  ;;  %v222_v62 = vmul.f32 0.01, %v176_v57  ;;  %vm214_vm9 = vcmp.ge.f32.partialorder %v176_v57, 0.0  ;;  %v231_v0 = vsel %vm215_vm8, %v181_v54, %v223_v60  ;;  %v383_v30 = vpop.permute.xlu0 %382 }
  0xcc   :  { %v185_v31 = vpop.f32.mrf.mxu0 }
  0xcd   :  { %v186_v49 = vadd.f32 %v185_v31, %v57_v40  ;;  %v225_v55 = vmul.f32 0.01, %v191_v45  ;;  %vm217_vm6 = vcmp.ge.f32.partialorder %v191_v45, 0.0  ;;  %v230_v1 = vsel %vm214_vm9, %v176_v57, %v222_v62 }
  0xce   :  { %v581_v34 = vpop.f32.mrf.mxu0 }
  0xcf   :  { %v201_v38 = vadd.f32 %v581_v34, %v72_v28  ;;  %v224_v58 = vmul.f32 0.01, %v186_v49  ;;  %vm216_vm7 = vcmp.ge.f32.partialorder %v186_v49, 0.0  ;;  %v233_v61 = vsel %vm217_vm6, %v191_v45, %v225_v55 }
  0xd0   :  { %v195_v35 = vpop.f32.mrf.mxu0 }
  0xd1   :  { %v196_v42 = vadd.f32 %v195_v35, %v67_v33  ;;  %v227_v46 = vmul.f32 0.01, %v201_v38  ;;  %vm219_vm4 = vcmp.ge.f32.partialorder %v201_v38, 0.0  ;;  %v232_v63 = vsel %vm216_vm7, %v186_v49, %v224_v58 }
  0xd2   :  { %v584_v36 = vpop.f32.mrf.mxu0 }
  0xd3   :  { %v211_v39 = vadd.f32 %v584_v36, %v82_v27  ;;  %v226_v50 = vmul.f32 0.01, %v196_v42  ;;  %vm218_vm5 = vcmp.ge.f32.partialorder %v196_v42, 0.0  ;;  %v235_v56 = vsel %vm219_vm4, %v201_v38, %v227_v46  ;;  %v388_v27 = vpop.permute.xlu1 %387 }
  0xd4   :  { %v205_v41 = vpop.f32.mrf.mxu0 }
  0xd5   :  { %v206_v43 = vadd.f32 %v205_v41, %v77_v32  ;;  %vm221_vm2 = vcmp.ge.f32.partialorder %v211_v39, 0.0  ;;  %v229_v44 = vmul.f32 0.01, %v211_v39  ;;  %v234_v59 = vsel %vm218_vm5, %v196_v42, %v226_v50 }
  0xd7   :  { %v228_v47 = vmul.f32 0.01, %v206_v43  ;;  %v237_v48 = vsel %vm221_vm2, %v211_v39, %v229_v44  ;;  %vm220_vm3 = vcmp.ge.f32.partialorder %v206_v43, 0.0 }
  0xd8   :  { %585 = vmatprep.subr.mxu1 %v237_v48 }
  0xd9   :  { %586 = vmatpush3.msra.mxu1 %v237_v48  ;;  %v236_v51 = vsel %vm220_vm3, %v206_v43, %v228_v47 }
  0xda   :  { %587 = vmatprep.subr.mxu1 %v236_v51 }
  0xdb   :  { %588 = vmatpush3.msra.mxu1 %v236_v51 }
  0xdc   :  { %589 = vmatprep.subr.mxu1 %v235_v56 }
  0xdd   :  { %590 = vmatpush3.msra.mxu1 %v235_v56 }
  0xde   :  { %591 = vmatprep.subr.mxu1 %v234_v59 }
  0xdf   :  { %592 = vmatpush3.msra.mxu1 %v234_v59 }
  0xe0   :  { %593 = vmatprep.subr.mxu1 %v233_v61 }
  0xe1   :  { %594 = vmatpush3.msra.mxu1 %v233_v61 }
  0xe2   :  { %595 = vmatprep.subr.mxu1 %v232_v63 }
  0xe3   :  { %596 = vmatpush3.msra.mxu1 %v232_v63 }
  0xe4   :  { %597 = vmatprep.subr.mxu1 %v231_v0 }
  0xe5   :  { %598 = vmatpush3.msra.mxu1 %v231_v0 }
  0xe6   :  { %599 = vmatprep.subr.mxu1 %v230_v1 }
  0xe7   :  { %600 = vmatpush3.msra.mxu1 %v230_v1 }
  0xe8   :  { %602 = vmatmul.mubr.msk.f32.vlgmr.msra.gmra.mxu1 %vm266_vm1, %v239_v2 }
  0xe9   :  { %604 = vmatprep.mubr.msk.f32.mxu1 %vm266_vm1, %v240_v3 }
  0xec   :  { %605 = vmatmul.mubr.msk.f32.gmra.mxu1 %vm266_vm1, %v241_v4 }
 0x1a8   :  { %v603_v8 = vpop.f32.mrf.mxu1 }
 0x1a9   :  { %v351_v12 = vadd.f32 %v603_v8, %v254_v10 }
 0x1aa   :  { %v345_v9 = vpop.f32.mrf.mxu1 }
 0x1ab   :  { %v346_v16 = vadd.f32 %v345_v9, %v249_v14  ;;  %v369_v19 = vmul.f32 0.01, %v351_v12  ;;  %vm365_vm13 = vcmp.ge.f32.partialorder %v351_v12, 0.0 }
 0x1ac   :  { %v606_v11 = vpop.f32.mrf.mxu1 }
 0x1ad   :  { %v361_v13 = vadd.f32 %v606_v11, %v264_v6  ;;  %v368_v22 = vmul.f32 0.01, %v346_v16  ;;  %vm364_vm14 = vcmp.ge.f32.partialorder %v346_v16, 0.0  ;;  %v373_v24 = vsel %vm365_vm13, %v351_v12, %v369_v19 }
 0x1ae   :  { %v355_v15 = vpop.f32.mrf.mxu1 }
 0x1af   :  { %v371_v17 = vmul.f32 0.01, %v361_v13  ;;  %v356_v18 = vadd.f32 %v355_v15, %v259_v7  ;;  %vm367_vm11 = vcmp.ge.f32.partialorder %v361_v13, 0.0  ;;  %v372_v25 = vsel %vm364_vm14, %v346_v16, %v368_v22 }
 0x1b1   :  { %v370_v20 = vmul.f32 0.01, %v356_v18  ;;  %v375_v21 = vsel %vm367_vm11, %v361_v13, %v371_v17  ;;  %vm366_vm12 = vcmp.ge.f32.partialorder %v356_v18, 0.0 }
 0x1b2   :  { %607 = vmatprep.subr.mxu0 %v375_v21 }
 0x1b3   :  { %608 = vmatpush3.msra.mxu0 %v375_v21  ;;  %v374_v23 = vsel %vm366_vm12, %v356_v18, %v370_v20 }
 0x1b4   :  { %609 = vmatprep.subr.mxu0 %v374_v23 }
 0x1b5   :  { %610 = vmatpush3.msra.mxu0 %v374_v23 }
 0x1b6   :  { %611 = vmatprep.subr.mxu0 %v373_v24 }
 0x1b7   :  { %612 = vmatpush3.msra.mxu0 %v373_v24 }
 0x1b8   :  { %613 = vmatprep.subr.mxu0 %v372_v25 }
 0x1b9   :  { %614 = vmatpush3.msra.mxu0 %v372_v25 }
 0x1ba   :  { %616 = vmatmul.mubr.msk.f32.vlgmr.msra.gmra.mxu0 %vm390_vm10, %v377_v26 }
 0x27a   :  { %v617_v28 = vpop.f32.mrf.mxu0 }
 0x27b   :  { %v469_v29 = vadd.f32 %v617_v28, %v388_v27 }
 0x27c   :  { %v463_v31 = vpop.f32.mrf.mxu0 }
 0x27d   :  { %v475_v32 = vmin.f32 %v469_v29, 20.0  ;;  %v464_v33 = vadd.f32 %v463_v31, %v383_v30  ;;  %vm473_vm1 = vcmp.gt.f32.partialorder %v469_v29, 20.0 }
 0x27f   :  { %v478_v34 = vmul.f32 1.442695, %v475_v32  ;;  %v474_v35 = vmin.f32 %v464_v33, 20.0  ;;  %vm472_vm2 = vcmp.gt.f32.partialorder %v464_v33, 20.0 }
 0x281   :  { %621 = vpow2.f32 %v478_v34  ;;  %v476_v36 = vmul.f32 1.442695, %v474_v35 }
 0x283   :  { %623 = vpow2.f32 %v476_v36 }
 0x28e   :  { %v622_v37 = vpop.eup %621 }
 0x28f   :  { %v489_v38 = vadd.f32 1.0, %v622_v37  ;;  %v492_v41 = vmul.f32 -0.5, %v622_v37  ;;  %v495_v44 = vand.u32 2147483647, %v622_v37 }
 0x290   :  { %v624_v39 = vpop.eup %623 }
 0x291   :  { %625 = vlog2.f32 %v489_v38  ;;  %v480_v40 = vadd.f32 1.0, %v624_v39  ;;  %v483_v42 = vmul.f32 -0.5, %v624_v39  ;;  %v493_v43 = vadd.f32 1.0, %v492_v41 }
 0x292   :  { %v486_v47 = vand.u32 2147483647, %v624_v39  ;;  %vm496_vm15 = vcmp.lt.f32.partialorder %v495_v44, 0.0004427343 }
 0x293   :  { %627 = vlog2.f32 %v480_v40  ;;  %v484_v45 = vadd.f32 1.0, %v483_v42  ;;  %v494_v49 = vmul.f32 %v622_v37, %v493_v43 }
 0x294   :  { %vm487_vm0 = vcmp.lt.f32.partialorder %v486_v47, 0.0004427343 }
 0x295   :  { %v485_v53 = vmul.f32 %v624_v39, %v484_v45 }
 0x29e   :  { %v626_v46 = vpop.eup %625 }
 0x29f   :  { %v491_v48 = vmul.f32 0.6931472, %v626_v46 }
 0x2a0   :  { %v628_v50 = vpop.eup %627 }
 0x2a1   :  { %v497_v51 = vsel %vm496_vm15, %v494_v49, %v491_v48  ;;  %v482_v52 = vmul.f32 0.6931472, %v628_v50 }
 0x2a2   :  { %v499_v55 = vsel %vm473_vm1, %v469_v29, %v497_v51 }
 0x2a3   :  { %v488_v54 = vsel %vm487_vm0, %v485_v53, %v482_v52 }
 0x2a4   :  { %v498_v56 = vsel %vm472_vm2, %v464_v33, %v488_v54 }
 0x2a5   :  { %v500_v57 = vmin.f32 %v498_v56, %v499_v55  ;;  %v507_v58 = vmax.f32 %v498_v56, %v499_v55 }
 0x2a7   :  { %v501_v59 = vrot.slane %v500_v57, 4  ;;  %v508_v60 = vrot.slane %v507_v58, 4 }
 0x2a9   :  { %v502_v61 = vmin.f32 %v500_v57, %v501_v59  ;;  %v509_v62 = vmax.f32 %v507_v58, %v508_v60 }
 0x2ab   :  { %v503_v63 = vrot.slane %v502_v61, 2  ;;  %v510_v0 = vrot.slane %v509_v62, 2 }
 0x2ad   :  { %v504_v1 = vmin.f32 %v502_v61, %v503_v63  ;;  %v511_v2 = vmax.f32 %v509_v62, %v510_v0 }
 0x2af   :  { %v505_v3 = vrot.slane %v504_v1, 1  ;;  %v512_v4 = vrot.slane %v511_v2, 1 }
 0x2b1   :  { %v506_v5 = vmin.f32 %v504_v1, %v505_v3  ;;  %v513_v6 = vmax.f32 %v511_v2, %v512_v4 }
 0x2b3   :  { %v514_v7 = vsub.f32 %v513_v6, %v506_v5  ;;  %v517_v9 = vsub.f32 %v498_v56, %v506_v5  ;;  %v518_v10 = vsub.f32 %v499_v55, %v506_v5 }
 0x2b5   :  { %v515_v8 = vadd.f32 1e-08, %v514_v7 }
 0x2b7   :  { %629 = vrcp.f32 %v515_v8 }
 0x2c4   :  { %v630_v11 = vpop.eup %629 }
 0x2c5   :  { %v519_v12 = vmul.f32 %v630_v11, %v517_v9  ;;  %v520_v13 = vmul.f32 %v630_v11, %v518_v10 }
 0x2c7   :  { %521 = vst [vmem:[%s789_s7] sm:$0xff] %v519_v12  ;;  %522 = vst [vmem:[%s789_s7 + $0x8] sm:$0xff] %v520_v13 }

</bundles_post_ra>
